<compile_context>
chip_gen: v6e
topology: v6e:2x2x1
jax: 0.10.0
libtpu: 0.0.40
codegen_flags: <defaults>
</compile_context>

<pallas_src>
import jax
import jax.numpy as jnp
from jax.experimental import pallas as pl
from jax.experimental.pallas import tpu as pltpu


def mlp_kernel(p_ref, x_ref, o_ref):
    """p_ref: (31,) f32 SMEM  [w1(3*6) | b1(6) | w2(6) | b2(1)]
       x_ref: (3, TN) f32 VMEM   (features x batch, batch on lanes)
       o_ref: (1, TN) f32 VMEM
    """
    x = x_ref[...]                                  # (3, TN)
    tn = x.shape[1]
    y = jnp.full((1, tn), p_ref[30], dtype=jnp.float32)   # bias2 broadcast
    # Unrolled over the 6 hidden units; all math is VPU broadcast-FMA.
    for j in range(6):
        h = x[0:1, :] * p_ref[0 * 6 + j]
        h = h + x[1:2, :] * p_ref[1 * 6 + j]
        h = h + x[2:3, :] * p_ref[2 * 6 + j]
        h = h + p_ref[18 + j]                        # bias1[j]
        h = jnp.maximum(h, 0.2 * h)                  # leaky_relu, slope 0.2
        y = y + h * p_ref[24 + j]                    # weight2[j, 0]
    e = jnp.exp(-y)                                  # EUP
    o_ref[...] = pl.reciprocal(1.0 + e, approx=True)  # sigmoid, EUP reciprocal


def mlp_forward(x, w1, b1, w2, b2, *, tn=2048):
    """x: (N, 3) f32 -> (N, 1) f32, matching the PyTorch module semantics."""
    n = x.shape[0]
    # Lane-dense tile size: at least 128, at most `tn`, multiple of 128.
    n_up = ((n + 127) // 128) * 128
    blk = min(tn, n_up)
    n_pad = ((n_up + blk - 1) // blk) * blk

    # Transpose to [features, N] and zero-pad the batch to a multiple of blk.
    xt = jnp.zeros((3, n_pad), jnp.float32).at[:, :n].set(x.astype(jnp.float32).T)

    # All 31 parameters flattened into one small SMEM array (scalar reads).
    params = jnp.concatenate(
        [w1.reshape(-1), b1.reshape(-1), w2.reshape(-1), b2.reshape(-1)]
    ).astype(jnp.float32)

    out = pl.pallas_call(
        mlp_kernel,
        out_shape=jax.ShapeDtypeStruct((1, n_pad), jnp.float32),
        grid=(n_pad // blk,),
        in_specs=[
            pl.BlockSpec(memory_space=pltpu.SMEM),          # params (whole, SMEM)
            pl.BlockSpec((3, blk), lambda i: (0, i)),        # x tile, lane-dense
        ],
        out_specs=pl.BlockSpec((1, blk), lambda i: (0, i)),  # lane-dense output
        compiler_params=pltpu.CompilerParams(
            dimension_semantics=("parallel",),               # megacore split on v7x
        ),
    )(params, xt)

    return out[0, :n].reshape(n, 1)


if __name__ == "__main__":
    key = jax.random.PRNGKey(0)
    k_x, k_w1, k_b1, k_w2, k_b2 = jax.random.split(key, 5)

    # Parameters with the shapes from Model.__init__.
    w1 = jax.random.normal(k_w1, (3, 6), dtype=jnp.float32)
    b1 = jax.random.normal(k_b1, (1, 6), dtype=jnp.float32)
    w2 = jax.random.normal(k_w2, (6, 1), dtype=jnp.float32)
    b2 = jax.random.normal(k_b2, (1, 1), dtype=jnp.float32)

    # Small example input consistent with the module: batch of 8 rows, 3 features.
    x = jax.random.normal(k_x, (8, 3), dtype=jnp.float32)

    out = mlp_forward(x, w1, b1, w2, b2)
    out = jax.block_until_ready(out)

    # Plain-JAX reference.
    h_ref = x @ w1 + b1
    h_ref = jnp.where(h_ref >= 0.0, h_ref, 0.2 * h_ref)
    y_ref = jax.nn.sigmoid(h_ref @ w2 + b2)

    assert out.shape == (8, 1)
    # approx=True reciprocal has ~1e-4 relative error; sigmoid output is in (0,1).
    assert jnp.allclose(out, y_ref, atol=1e-3, rtol=1e-3), "mismatch vs reference"

    print("KERNEL_OK")
</pallas_src>

<mosaic_0001>
module attributes {stable_mosaic.version = 11 : i64} {
  func.func @mlp_kernel(%arg0: i32, %arg1: memref<31xf32, #tpu.memory_space<smem>>, %arg2: memref<3x128xf32, #tpu.memory_space<vmem>>, %arg3: memref<1x128xf32, #tpu.memory_space<vmem>>) attributes {dimension_semantics = [#tpu.dimension_semantics<parallel>], iteration_bounds = array<i64: 1>, scalar_prefetch = 0 : i64, scratch_operands = 0 : i64, tpu.core_type = #tpu.core_type<tc>, window_params = [{transform_indices = @transform_0, window_bounds = array<i64: 31>}, {transform_indices = @transform_1, window_bounds = array<i64: 3, 128>}, {transform_indices = @transform_2, window_bounds = array<i64: 1, 128>}]} {
    %c0 = arith.constant 0 : index
    %c0_0 = arith.constant 0 : index
    %0 = vector.load %arg2[%c0, %c0_0] : memref<3x128xf32, #tpu.memory_space<vmem>>, vector<3x128xf32>
    %c30 = arith.constant 30 : index
    %1 = memref.load %arg1[%c30] : memref<31xf32, #tpu.memory_space<smem>>
    %2 = vector.broadcast %1 : f32 to vector<1x128xf32>
    %3 = vector.extract_strided_slice %0 {offsets = [0, 0], sizes = [1, 128], strides = [1, 1]} : vector<3x128xf32> to vector<1x128xf32>
    %c0_1 = arith.constant 0 : index
    %4 = memref.load %arg1[%c0_1] : memref<31xf32, #tpu.memory_space<smem>>
    %5 = vector.broadcast %4 : f32 to vector<1x128xf32>
    %6 = arith.mulf %3, %5 : vector<1x128xf32>
    %7 = vector.extract_strided_slice %0 {offsets = [1, 0], sizes = [1, 128], strides = [1, 1]} : vector<3x128xf32> to vector<1x128xf32>
    %c6 = arith.constant 6 : index
    %8 = memref.load %arg1[%c6] : memref<31xf32, #tpu.memory_space<smem>>
    %9 = vector.broadcast %8 : f32 to vector<1x128xf32>
    %10 = arith.mulf %7, %9 : vector<1x128xf32>
    %11 = arith.addf %6, %10 : vector<1x128xf32>
    %12 = vector.extract_strided_slice %0 {offsets = [2, 0], sizes = [1, 128], strides = [1, 1]} : vector<3x128xf32> to vector<1x128xf32>
    %c12 = arith.constant 12 : index
    %13 = memref.load %arg1[%c12] : memref<31xf32, #tpu.memory_space<smem>>
    %14 = vector.broadcast %13 : f32 to vector<1x128xf32>
    %15 = arith.mulf %12, %14 : vector<1x128xf32>
    %16 = arith.addf %11, %15 : vector<1x128xf32>
    %c18 = arith.constant 18 : index
    %17 = memref.load %arg1[%c18] : memref<31xf32, #tpu.memory_space<smem>>
    %18 = vector.broadcast %17 : f32 to vector<1x128xf32>
    %19 = arith.addf %16, %18 : vector<1x128xf32>
    %cst = arith.constant 2.000000e-01 : f32
    %20 = vector.broadcast %cst : f32 to vector<1x128xf32>
    %21 = arith.mulf %20, %19 : vector<1x128xf32>
    %22 = arith.maximumf %19, %21 : vector<1x128xf32>
    %c24 = arith.constant 24 : index
    %23 = memref.load %arg1[%c24] : memref<31xf32, #tpu.memory_space<smem>>
    %24 = vector.broadcast %23 : f32 to vector<1x128xf32>
    %25 = arith.mulf %22, %24 : vector<1x128xf32>
    %26 = arith.addf %2, %25 : vector<1x128xf32>
    %27 = vector.extract_strided_slice %0 {offsets = [0, 0], sizes = [1, 128], strides = [1, 1]} : vector<3x128xf32> to vector<1x128xf32>
    %c1 = arith.constant 1 : index
    %28 = memref.load %arg1[%c1] : memref<31xf32, #tpu.memory_space<smem>>
    %29 = vector.broadcast %28 : f32 to vector<1x128xf32>
    %30 = arith.mulf %27, %29 : vector<1x128xf32>
    %31 = vector.extract_strided_slice %0 {offsets = [1, 0], sizes = [1, 128], strides = [1, 1]} : vector<3x128xf32> to vector<1x128xf32>
    %c7 = arith.constant 7 : index
    %32 = memref.load %arg1[%c7] : memref<31xf32, #tpu.memory_space<smem>>
    %33 = vector.broadcast %32 : f32 to vector<1x128xf32>
    %34 = arith.mulf %31, %33 : vector<1x128xf32>
    %35 = arith.addf %30, %34 : vector<1x128xf32>
    %36 = vector.extract_strided_slice %0 {offsets = [2, 0], sizes = [1, 128], strides = [1, 1]} : vector<3x128xf32> to vector<1x128xf32>
    %c13 = arith.constant 13 : index
    %37 = memref.load %arg1[%c13] : memref<31xf32, #tpu.memory_space<smem>>
    %38 = vector.broadcast %37 : f32 to vector<1x128xf32>
    %39 = arith.mulf %36, %38 : vector<1x128xf32>
    %40 = arith.addf %35, %39 : vector<1x128xf32>
    %c19 = arith.constant 19 : index
    %41 = memref.load %arg1[%c19] : memref<31xf32, #tpu.memory_space<smem>>
    %42 = vector.broadcast %41 : f32 to vector<1x128xf32>
    %43 = arith.addf %40, %42 : vector<1x128xf32>
    %cst_2 = arith.constant 2.000000e-01 : f32
    %44 = vector.broadcast %cst_2 : f32 to vector<1x128xf32>
    %45 = arith.mulf %44, %43 : vector<1x128xf32>
    %46 = arith.maximumf %43, %45 : vector<1x128xf32>
    %c25 = arith.constant 25 : index
    %47 = memref.load %arg1[%c25] : memref<31xf32, #tpu.memory_space<smem>>
    %48 = vector.broadcast %47 : f32 to vector<1x128xf32>
    %49 = arith.mulf %46, %48 : vector<1x128xf32>
    %50 = arith.addf %26, %49 : vector<1x128xf32>
    %51 = vector.extract_strided_slice %0 {offsets = [0, 0], sizes = [1, 128], strides = [1, 1]} : vector<3x128xf32> to vector<1x128xf32>
    %c2 = arith.constant 2 : index
    %52 = memref.load %arg1[%c2] : memref<31xf32, #tpu.memory_space<smem>>
    %53 = vector.broadcast %52 : f32 to vector<1x128xf32>
    %54 = arith.mulf %51, %53 : vector<1x128xf32>
    %55 = vector.extract_strided_slice %0 {offsets = [1, 0], sizes = [1, 128], strides = [1, 1]} : vector<3x128xf32> to vector<1x128xf32>
    %c8 = arith.constant 8 : index
    %56 = memref.load %arg1[%c8] : memref<31xf32, #tpu.memory_space<smem>>
    %57 = vector.broadcast %56 : f32 to vector<1x128xf32>
    %58 = arith.mulf %55, %57 : vector<1x128xf32>
    %59 = arith.addf %54, %58 : vector<1x128xf32>
    %60 = vector.extract_strided_slice %0 {offsets = [2, 0], sizes = [1, 128], strides = [1, 1]} : vector<3x128xf32> to vector<1x128xf32>
    %c14 = arith.constant 14 : index
    %61 = memref.load %arg1[%c14] : memref<31xf32, #tpu.memory_space<smem>>
    %62 = vector.broadcast %61 : f32 to vector<1x128xf32>
    %63 = arith.mulf %60, %62 : vector<1x128xf32>
    %64 = arith.addf %59, %63 : vector<1x128xf32>
    %c20 = arith.constant 20 : index
    %65 = memref.load %arg1[%c20] : memref<31xf32, #tpu.memory_space<smem>>
    %66 = vector.broadcast %65 : f32 to vector<1x128xf32>
    %67 = arith.addf %64, %66 : vector<1x128xf32>
    %cst_3 = arith.constant 2.000000e-01 : f32
    %68 = vector.broadcast %cst_3 : f32 to vector<1x128xf32>
    %69 = arith.mulf %68, %67 : vector<1x128xf32>
    %70 = arith.maximumf %67, %69 : vector<1x128xf32>
    %c26 = arith.constant 26 : index
    %71 = memref.load %arg1[%c26] : memref<31xf32, #tpu.memory_space<smem>>
    %72 = vector.broadcast %71 : f32 to vector<1x128xf32>
    %73 = arith.mulf %70, %72 : vector<1x128xf32>
    %74 = arith.addf %50, %73 : vector<1x128xf32>
    %75 = vector.extract_strided_slice %0 {offsets = [0, 0], sizes = [1, 128], strides = [1, 1]} : vector<3x128xf32> to vector<1x128xf32>
    %c3 = arith.constant 3 : index
    %76 = memref.load %arg1[%c3] : memref<31xf32, #tpu.memory_space<smem>>
    %77 = vector.broadcast %76 : f32 to vector<1x128xf32>
    %78 = arith.mulf %75, %77 : vector<1x128xf32>
    %79 = vector.extract_strided_slice %0 {offsets = [1, 0], sizes = [1, 128], strides = [1, 1]} : vector<3x128xf32> to vector<1x128xf32>
    %c9 = arith.constant 9 : index
    %80 = memref.load %arg1[%c9] : memref<31xf32, #tpu.memory_space<smem>>
    %81 = vector.broadcast %80 : f32 to vector<1x128xf32>
    %82 = arith.mulf %79, %81 : vector<1x128xf32>
    %83 = arith.addf %78, %82 : vector<1x128xf32>
    %84 = vector.extract_strided_slice %0 {offsets = [2, 0], sizes = [1, 128], strides = [1, 1]} : vector<3x128xf32> to vector<1x128xf32>
    %c15 = arith.constant 15 : index
    %85 = memref.load %arg1[%c15] : memref<31xf32, #tpu.memory_space<smem>>
    %86 = vector.broadcast %85 : f32 to vector<1x128xf32>
    %87 = arith.mulf %84, %86 : vector<1x128xf32>
    %88 = arith.addf %83, %87 : vector<1x128xf32>
    %c21 = arith.constant 21 : index
    %89 = memref.load %arg1[%c21] : memref<31xf32, #tpu.memory_space<smem>>
    %90 = vector.broadcast %89 : f32 to vector<1x128xf32>
    %91 = arith.addf %88, %90 : vector<1x128xf32>
    %cst_4 = arith.constant 2.000000e-01 : f32
    %92 = vector.broadcast %cst_4 : f32 to vector<1x128xf32>
    %93 = arith.mulf %92, %91 : vector<1x128xf32>
    %94 = arith.maximumf %91, %93 : vector<1x128xf32>
    %c27 = arith.constant 27 : index
    %95 = memref.load %arg1[%c27] : memref<31xf32, #tpu.memory_space<smem>>
    %96 = vector.broadcast %95 : f32 to vector<1x128xf32>
    %97 = arith.mulf %94, %96 : vector<1x128xf32>
    %98 = arith.addf %74, %97 : vector<1x128xf32>
    %99 = vector.extract_strided_slice %0 {offsets = [0, 0], sizes = [1, 128], strides = [1, 1]} : vector<3x128xf32> to vector<1x128xf32>
    %c4 = arith.constant 4 : index
    %100 = memref.load %arg1[%c4] : memref<31xf32, #tpu.memory_space<smem>>
    %101 = vector.broadcast %100 : f32 to vector<1x128xf32>
    %102 = arith.mulf %99, %101 : vector<1x128xf32>
    %103 = vector.extract_strided_slice %0 {offsets = [1, 0], sizes = [1, 128], strides = [1, 1]} : vector<3x128xf32> to vector<1x128xf32>
    %c10 = arith.constant 10 : index
    %104 = memref.load %arg1[%c10] : memref<31xf32, #tpu.memory_space<smem>>
    %105 = vector.broadcast %104 : f32 to vector<1x128xf32>
    %106 = arith.mulf %103, %105 : vector<1x128xf32>
    %107 = arith.addf %102, %106 : vector<1x128xf32>
    %108 = vector.extract_strided_slice %0 {offsets = [2, 0], sizes = [1, 128], strides = [1, 1]} : vector<3x128xf32> to vector<1x128xf32>
    %c16 = arith.constant 16 : index
    %109 = memref.load %arg1[%c16] : memref<31xf32, #tpu.memory_space<smem>>
    %110 = vector.broadcast %109 : f32 to vector<1x128xf32>
    %111 = arith.mulf %108, %110 : vector<1x128xf32>
    %112 = arith.addf %107, %111 : vector<1x128xf32>
    %c22 = arith.constant 22 : index
    %113 = memref.load %arg1[%c22] : memref<31xf32, #tpu.memory_space<smem>>
    %114 = vector.broadcast %113 : f32 to vector<1x128xf32>
    %115 = arith.addf %112, %114 : vector<1x128xf32>
    %cst_5 = arith.constant 2.000000e-01 : f32
    %116 = vector.broadcast %cst_5 : f32 to vector<1x128xf32>
    %117 = arith.mulf %116, %115 : vector<1x128xf32>
    %118 = arith.maximumf %115, %117 : vector<1x128xf32>
    %c28 = arith.constant 28 : index
    %119 = memref.load %arg1[%c28] : memref<31xf32, #tpu.memory_space<smem>>
    %120 = vector.broadcast %119 : f32 to vector<1x128xf32>
    %121 = arith.mulf %118, %120 : vector<1x128xf32>
    %122 = arith.addf %98, %121 : vector<1x128xf32>
    %123 = vector.extract_strided_slice %0 {offsets = [0, 0], sizes = [1, 128], strides = [1, 1]} : vector<3x128xf32> to vector<1x128xf32>
    %c5 = arith.constant 5 : index
    %124 = memref.load %arg1[%c5] : memref<31xf32, #tpu.memory_space<smem>>
    %125 = vector.broadcast %124 : f32 to vector<1x128xf32>
    %126 = arith.mulf %123, %125 : vector<1x128xf32>
    %127 = vector.extract_strided_slice %0 {offsets = [1, 0], sizes = [1, 128], strides = [1, 1]} : vector<3x128xf32> to vector<1x128xf32>
    %c11 = arith.constant 11 : index
    %128 = memref.load %arg1[%c11] : memref<31xf32, #tpu.memory_space<smem>>
    %129 = vector.broadcast %128 : f32 to vector<1x128xf32>
    %130 = arith.mulf %127, %129 : vector<1x128xf32>
    %131 = arith.addf %126, %130 : vector<1x128xf32>
    %132 = vector.extract_strided_slice %0 {offsets = [2, 0], sizes = [1, 128], strides = [1, 1]} : vector<3x128xf32> to vector<1x128xf32>
    %c17 = arith.constant 17 : index
    %133 = memref.load %arg1[%c17] : memref<31xf32, #tpu.memory_space<smem>>
    %134 = vector.broadcast %133 : f32 to vector<1x128xf32>
    %135 = arith.mulf %132, %134 : vector<1x128xf32>
    %136 = arith.addf %131, %135 : vector<1x128xf32>
    %c23 = arith.constant 23 : index
    %137 = memref.load %arg1[%c23] : memref<31xf32, #tpu.memory_space<smem>>
    %138 = vector.broadcast %137 : f32 to vector<1x128xf32>
    %139 = arith.addf %136, %138 : vector<1x128xf32>
    %cst_6 = arith.constant 2.000000e-01 : f32
    %140 = vector.broadcast %cst_6 : f32 to vector<1x128xf32>
    %141 = arith.mulf %140, %139 : vector<1x128xf32>
    %142 = arith.maximumf %139, %141 : vector<1x128xf32>
    %c29 = arith.constant 29 : index
    %143 = memref.load %arg1[%c29] : memref<31xf32, #tpu.memory_space<smem>>
    %144 = vector.broadcast %143 : f32 to vector<1x128xf32>
    %145 = arith.mulf %142, %144 : vector<1x128xf32>
    %146 = arith.addf %122, %145 : vector<1x128xf32>
    %cst_7 = arith.constant 0.000000e+00 : f32
    %147 = vector.broadcast %cst_7 : f32 to vector<1x128xf32>
    %148 = arith.subf %147, %146 : vector<1x128xf32>
    %149 = math.exp %148 : vector<1x128xf32>
    %cst_8 = arith.constant 1.000000e+00 : f32
    %150 = vector.broadcast %cst_8 : f32 to vector<1x128xf32>
    %151 = arith.addf %150, %149 : vector<1x128xf32>
    %152 = tpu.reciprocal %151 {approx = true} : vector<1x128xf32> -> vector<1x128xf32>
    %c0_9 = arith.constant 0 : index
    %c0_10 = arith.constant 0 : index
    %153 = vector.load %arg3[%c0_9, %c0_10] : memref<1x128xf32, #tpu.memory_space<vmem>>, vector<1x128xf32>
    tpu.vector_store %arg3[%c0_9, %c0_10], %152 {strides = array<i32>} : memref<1x128xf32, #tpu.memory_space<vmem>>, vector<1x128xf32>,
    return
  }
  func.func @transform_0(%arg0: i32) -> i32 {
    %c0_i32 = arith.constant 0 : i32
    %c0_i32_0 = arith.constant 0 : i32
    return %c0_i32 : i32
  }
  func.func @transform_1(%arg0: i32) -> (i32, i32) {
    %c0_i32 = arith.constant 0 : i32
    %c0_i32_0 = arith.constant 0 : i32
    return %c0_i32, %arg0 : i32, i32
  }
  func.func @transform_2(%arg0: i32) -> (i32, i32) {
    %c0_i32 = arith.constant 0 : i32
    %c0_i32_0 = arith.constant 0 : i32
    return %c0_i32, %arg0 : i32, i32
  }
}

</mosaic_0001>

<bundles_post_ra>
// kernel: tpu_custom_call.1
= control target key start
LH: loop header
LB: loop body
LE: loop exit
PB: predicated region body
PF: predicated region fallthrough
CT: control target
= control target key end

     0   :  { %7 = vsyncpa [#allocation5], 0  ;;  %s396_s0 = inlined_call_operand.hbm [shape: f32[31], index: 0, kind: input, shape index: {}]   ;;  %s397_s1 = inlined_call_operand.hbm [shape: f32[3,128], index: 1, kind: input, shape index: {}]   ;;  %s398_s2 = inlined_call_operand.hbm [shape: f32[1,128], index: 2, kind: output, shape index: {}]  }
   0x1   :  { %8 = vsyncpa [#allocation3], 0 }
   0x2   :  { %9 = vsyncpa [#allocation4], 0  ;;  %s307_s9 = smov [#allocation2]   ;;  %s308_s12 = smov [#allocation6]  }
   0x3   :  { %17 = dma.hbm_to_smem %s396_s0, 16, %s307_s9, [#allocation5]  }
   0x4   :  { %s24_s13 = sshll.u32 %s308_s12, 4  ;;  %s25_s13 = int_to_ptr.vmem [resolvable:$true] %s24_s13 }
   0x5   :  { %s269_s14 = scalar_lea.vmem %s25_s13, 64  ;;  %p274_p1 = scmp.lt.s32.totalorder %s25_s13, %s25_s13 }
   0x6   :  { %p270_p0 = scmp.ne.s32.totalorder %s25_s13, %s269_s14  ;;  %p275_p2 = scmp.lt.s32.totalorder %s269_s14, %s269_s14 }
   0x8   :  { %p276_p3 = por %p275_p2, %p274_p1 }
   0xa   :  { %p277_p4 = pnand %p276_p3, %p270_p0 }
   0xc   :  { %280 = shalt.err (!%p277_p4)
}
   0xd   :  { %27 = dma.hbm_to_vmem [thread:$0]  %s397_s1, 64, %s25_s13, [#allocation3]  }
   0xe   :  { %301 = dma.done.wait [#allocation5], 16  }
   0xf   :  { %302 = vsyncadd [#allocation5], 4294967280 }
  0x10   :  { %303 = dma.done.wait [#allocation3], 64  }
  0x11   :  { %304 = vsyncadd [#allocation3], 4294967232 }
  0x12   :  { %34 = sfence }
  0x13   :  { %s38_s0 = sld [smem:[#allocation2]]  ;;  %v335_v0 = vld [vmem:[#allocation6] sm:$0x7] }
  0x14   :  { %s217_s17 = sld [smem:[#allocation2 + $0x6]] }
  0x15   :  { %s218_s18 = sld [smem:[#allocation2 + $0xc]] }
  0x16   :  { %s331_s19 = sld [smem:[#allocation2 + $0x1e]] }
  0x17   :  { %s333_s20 = sld [smem:[#allocation2 + $0x12]] }
  0x18   :  { %s221_s21 = sld [smem:[#allocation2 + $0x1]] }
  0x19   :  { %v39_v1 = vstv %s38_s0  ;;  %s222_s22 = sld [smem:[#allocation2 + $0x7]] }
  0x1a   :  { %v42_v2 = vstv %s217_s17  ;;  %s223_s1 = sld [smem:[#allocation2 + $0xd]]  ;;  %v40_v3 = vmul.f32 %v39_v1, %v335_v0  ;;  %s309_s17 = smov [#allocation7]  }
  0x1b   :  { %v43_v4 = vmul.f32 %v42_v2, %v335_v0  ;;  %v49_v5 = vstv %s218_s18  ;;  %s339_s23 = sld [smem:[#allocation2 + $0x18]]  ;;  %s206_s18 = sshll.u32 %s309_s17, 4  ;;  %s207_s18 = int_to_ptr.vmem [resolvable:$true] %s206_s18 }
  0x1c   :  { %v50_v6 = vmul.f32 %v49_v5, %v335_v0  ;;  %s342_s24 = sld [smem:[#allocation2 + $0x13]]  ;;  %v37_v34 = vstv %s331_s19  ;;  %s281_s19 = scalar_lea.vmem %s207_s18, 16 }
  0x1d   :  { %v45_v7 = vrot.slane %v43_v4, 1  ;;  %s226_s25 = sld [smem:[#allocation2 + $0x2]]  ;;  %v56_v12 = vstv %s333_s20  ;;  %p282_p5 = scmp.ne.s32.totalorder %s207_s18, %s281_s19 }
  0x1e   :  { %v52_v8 = vrot.slane %v50_v6, 2  ;;  %v65_v9 = vstv %s221_s21  ;;  %s227_s26 = sld [smem:[#allocation2 + $0x8]]  ;;  %s285_s20 = scalar_lea.vmem %s207_s18, 32 }
  0x1f   :  { %v47_v10 = vadd.f32 %v45_v7, %v40_v3  ;;  %v68_v11 = vstv %s222_s22  ;;  %s228_s27 = sld [smem:[#allocation2 + $0xe]]  ;;  %v66_v13 = vmul.f32 %v65_v9, %v335_v0  ;;  %p286_p6 = scmp.lt.s32.totalorder %s207_s18, %s207_s18 }
  0x20   :  { %v69_v14 = vmul.f32 %v68_v11, %v335_v0  ;;  %v75_v15 = vstv %s223_s1  ;;  %s347_s28 = sld [smem:[#allocation2 + $0x19]]  ;;  %p287_p7 = scmp.lt.s32.totalorder %s285_s20, %s281_s19 }
  0x21   :  { %v54_v16 = vadd.f32 %v52_v8, %v47_v10  ;;  %v76_v17 = vmul.f32 %v75_v15, %v335_v0  ;;  %s350_s29 = sld [smem:[#allocation2 + $0x14]]  ;;  %v61_v29 = vstv %s339_s23 }
  0x22   :  { %v71_v18 = vrot.slane %v69_v14, 1  ;;  %s352_s30 = sld [smem:[#allocation2 + $0x3]]  ;;  %v82_v23 = vstv %s342_s24  ;;  %p288_p8 = por %p287_p7, %p286_p6 }
  0x23   :  { %v57_v19 = vadd.f32 %v56_v12, %v54_v16  ;;  %v78_v20 = vrot.slane %v76_v17, 2  ;;  %v91_v21 = vstv %s226_s25  ;;  %s232_s3 = sld [smem:[#allocation2 + $0x9]] }
  0x24   :  { %v73_v22 = vadd.f32 %v71_v18, %v66_v13  ;;  %v94_v24 = vstv %s227_s26  ;;  %s233_s4 = sld [smem:[#allocation2 + $0xf]]  ;;  %v92_v26 = vmul.f32 %v91_v21, %v335_v0  ;;  %p289_p9 = pnand %p288_p8, %p282_p5 }
  0x25   :  { %v58_v25 = vmul.f32 0.2, %v57_v19  ;;  %v95_v27 = vmul.f32 %v94_v24, %v335_v0  ;;  %v101_v28 = vstv %s228_s27  ;;  %s357_s5 = sld [smem:[#allocation2 + $0x1a]] }
  0x26   :  { %v80_v30 = vadd.f32 %v78_v20, %v73_v22  ;;  %v102_v31 = vmul.f32 %v101_v28, %v335_v0  ;;  %s361_s6 = sld [smem:[#allocation2 + $0x15]]  ;;  %v87_v46 = vstv %s347_s28 }
  0x27   :  { %v59_v32 = vmax.f32 %v57_v19, %v58_v25  ;;  %v97_v33 = vrot.slane %v95_v27, 1  ;;  %s363_s7 = sld [smem:[#allocation2 + $0x4]]  ;;  %v108_v40 = vstv %s350_s29 }
  0x28   :  { %v83_v35 = vadd.f32 %v82_v23, %v80_v30  ;;  %v104_v36 = vrot.slane %v102_v31, 2  ;;  %v117_v37 = vstv %s352_s30  ;;  %s237_s8 = sld [smem:[#allocation2 + $0xa]] }
  0x29   :  { %v62_v38 = vmul.f32 %v61_v29, %v59_v32  ;;  %v99_v39 = vadd.f32 %v97_v33, %v92_v26  ;;  %v120_v41 = vstv %s232_s3  ;;  %s238_s9 = sld [smem:[#allocation2 + $0x10]]  ;;  %v118_v43 = vmul.f32 %v117_v37, %v335_v0 }
  0x2a   :  { %v84_v42 = vmul.f32 0.2, %v83_v35  ;;  %v121_v44 = vmul.f32 %v120_v41, %v335_v0  ;;  %v127_v45 = vstv %s233_s4  ;;  %s370_s10 = sld [smem:[#allocation2 + $0x1b]] }
  0x2b   :  { %v106_v47 = vadd.f32 %v104_v36, %v99_v39  ;;  %v128_v48 = vmul.f32 %v127_v45, %v335_v0  ;;  %s374_s11 = sld [smem:[#allocation2 + $0x16]]  ;;  %v63_v51 = vadd.f32 %v62_v38, %v37_v34  ;;  %v113_v63 = vstv %s357_s5 }
  0x2c   :  { %v85_v49 = vmax.f32 %v83_v35, %v84_v42  ;;  %v123_v50 = vrot.slane %v121_v44, 1  ;;  %s376_s12 = sld [smem:[#allocation2 + $0x5]]  ;;  %v134_v57 = vstv %s361_s6 }
  0x2d   :  { %v109_v52 = vadd.f32 %v108_v40, %v106_v47  ;;  %v130_v53 = vrot.slane %v128_v48, 2  ;;  %v143_v54 = vstv %s363_s7  ;;  %s242_s13 = sld [smem:[#allocation2 + $0xb]] }
  0x2e   :  { %v88_v55 = vmul.f32 %v87_v46, %v85_v49  ;;  %v125_v56 = vadd.f32 %v123_v50, %v118_v43  ;;  %v146_v58 = vstv %s237_s8  ;;  %s243_s14 = sld [smem:[#allocation2 + $0x11]]  ;;  %v144_v60 = vmul.f32 %v143_v54, %v335_v0 }
  0x2f   :  { %v110_v59 = vmul.f32 0.2, %v109_v52  ;;  %v147_v61 = vmul.f32 %v146_v58, %v335_v0  ;;  %v153_v62 = vstv %s238_s9  ;;  %s384_s15 = sld [smem:[#allocation2 + $0x17]] }
  0x30   :  { %v132_v1 = vadd.f32 %v130_v53, %v125_v56  ;;  %v154_v2 = vmul.f32 %v153_v62, %v335_v0  ;;  %v89_v5 = vadd.f32 %v88_v55, %v63_v51  ;;  %s240_s16 = sld [smem:[#allocation2 + $0x1c]]  ;;  %v139_v17 = vstv %s370_s10 }
  0x31   :  { %v111_v3 = vmax.f32 %v109_v52, %v110_v59  ;;  %v149_v4 = vrot.slane %v147_v61, 1  ;;  %v160_v11 = vstv %s374_s11  ;;  %s245_s0 = sld [smem:[#allocation2 + $0x1d]] }
  0x32   :  { %v135_v6 = vadd.f32 %v134_v57, %v132_v1  ;;  %v156_v7 = vrot.slane %v154_v2, 2  ;;  %v169_v8 = vstv %s376_s12 }
  0x33   :  { %v114_v9 = vmul.f32 %v113_v63, %v111_v3  ;;  %v151_v10 = vadd.f32 %v149_v4, %v144_v60  ;;  %v172_v12 = vstv %s242_s13  ;;  %v170_v14 = vmul.f32 %v169_v8, %v335_v0 }
  0x34   :  { %v136_v13 = vmul.f32 0.2, %v135_v6  ;;  %v173_v15 = vmul.f32 %v172_v12, %v335_v0  ;;  %v179_v16 = vstv %s243_s14 }
  0x35   :  { %v158_v18 = vadd.f32 %v156_v7, %v151_v10  ;;  %v180_v19 = vmul.f32 %v179_v16, %v335_v0  ;;  %v115_v24 = vadd.f32 %v114_v9, %v89_v5  ;;  %v186_v28 = vstv %s384_s15 }
  0x36   :  { %v137_v20 = vmax.f32 %v135_v6, %v136_v13  ;;  %v175_v21 = vrot.slane %v173_v15, 1  ;;  %v165_v29 = vstv %s240_s16 }
  0x37   :  { %v161_v22 = vadd.f32 %v160_v11, %v158_v18  ;;  %v182_v23 = vrot.slane %v180_v19, 2  ;;  %v191_v36 = vstv %s245_s0 }
  0x38   :  { %v140_v25 = vmul.f32 %v139_v17, %v137_v20  ;;  %v177_v26 = vadd.f32 %v175_v21, %v170_v14 }
  0x39   :  { %v162_v27 = vmul.f32 0.2, %v161_v22 }
  0x3a   :  { %v184_v30 = vadd.f32 %v182_v23, %v177_v26  ;;  %v141_v32 = vadd.f32 %v140_v25, %v115_v24 }
  0x3b   :  { %v163_v31 = vmax.f32 %v161_v22, %v162_v27 }
  0x3c   :  { %v187_v33 = vadd.f32 %v186_v28, %v184_v30 }
  0x3d   :  { %v166_v34 = vmul.f32 %v165_v29, %v163_v31 }
  0x3e   :  { %v188_v35 = vmul.f32 0.2, %v187_v33 }
  0x3f   :  { %v167_v37 = vadd.f32 %v166_v34, %v141_v32 }
  0x40   :  { %v189_v0 = vmax.f32 %v187_v33, %v188_v35 }
  0x42   :  { %v192_v38 = vmul.f32 %v191_v36, %v189_v0 }
  0x44   :  { %v193_v39 = vadd.f32 %v192_v38, %v167_v37 }
  0x46   :  { %v194_v40 = vsub.f32 0.0, %v193_v39 }
  0x48   :  { %v195_v41 = vmul.f32 1.442695, %v194_v40 }
  0x4a   :  { %249 = vpow2.f32 %v195_v41 }
  0x57   :  { %v250_v42 = vpop.eup %249 }
  0x58   :  { %v197_v43 = vadd.f32 1.0, %v250_v42 }
  0x5a   :  { %251 = vrcp.f32 %v197_v43 }
  0x67   :  { %v252_v44 = vpop.eup %251 }
  0x68   :  { %199 = vst [vmem:[#allocation7] sm:$0x1] %v252_v44 }
  0x69   :  { %292 = shalt.err (!%p289_p9)
}
  0x6a   :  { %209 = dma.vmem_to_hbm [thread:$0]  %s207_s18, 16, %s398_s2, [#allocation4]  }
  0x6b   :  { %305 = dma.done.wait [#allocation4], 16  }
  0x6c   :  { %306 = vsyncadd [#allocation4], 4294967280 }
  0x6d   :  { %213 = vsyncpa [#allocation3], 1 }
  0x6e   :  { %214 = vsyncpa [#allocation4], 1 }
  0x6f   :  { %215 = vsyncpa [#allocation5], 1 }

</bundles_post_ra>
